<compile_context>
chip_gen: v7x
topology: tpu7x:2x2x1
jax: 0.10.0
libtpu: 0.0.40
codegen_flags: <defaults>
</compile_context>

<pallas_src>
import functools

import jax
import jax.numpy as jnp
from jax.experimental import pallas as pl
from jax.experimental.pallas import tpu as pltpu


def _rope_kernel(cos_ref, sin_e_ref, sin_o_ref, x_ref, o_ref):
    """cos_ref            : (S_BLK, D) f32, cos table (interleaved-duplicated)
       sin_e_ref          : (S_BLK, D) f32, = -sin on even lanes, 0 on odd lanes
       sin_o_ref          : (S_BLK, D) f32, = +sin on odd lanes, 0 on even lanes
       x_ref / o_ref      : (BH_BLK, S_BLK, D) input / output blocks.

    out[..., 2j]   = x[2j]   * cos - x[2j+1] * sin
    out[..., 2j+1] = x[2j+1] * cos + x[2j]   * sin
    implemented as:  x*cos + roll(x,-1)*sin_e + roll(x,+1)*sin_o
    (the wrap-around lanes of each roll are multiplied by the zero lanes of the
    corresponding masked-sin table, so no select / iota is needed).
    """
    x = x_ref[...].astype(jnp.float32)                    # (BH, S, D) block
    left = jnp.roll(x, -1, axis=-1)                       # left[k]  = x[k+1]
    right = jnp.roll(x, 1, axis=-1)                       # right[k] = x[k-1]
    out = (x * cos_ref[...][None, :, :]
           + left * sin_e_ref[...][None, :, :]
           + right * sin_o_ref[...][None, :, :])
    o_ref[...] = out.astype(o_ref.dtype)


def _choose_tiles(bh, s, d, itemsize):
    # S tile: full S (always legal) or 1024 rows (multiple of 8 sublanes).
    s_blk = s if s <= 1024 else 1024
    # (batch*head) tile: aim for ~1 MiB of x per grid step — big enough to
    # amortize per-step overhead, small enough (with double-buffered in+out and
    # f32 temporaries) to fit comfortably in scoped VMEM on v5e/v6e/v7x.
    target_bytes = 1 * 1024 * 1024
    bh_blk = max(1, min(bh, target_bytes // max(1, s_blk * d * itemsize)))
    return bh_blk, s_blk


@functools.partial(jax.jit, static_argnames=("interpolate_factor",))
def _rope_forward(x, inv_freq, offset, interpolate_factor):
    B, H, S, D = x.shape
    dtype = x.dtype

    # One-time (S, D) tables — tiny, computed in plain JAX, so the kernel does
    # zero transcendentals.
    seq = (jnp.arange(S, dtype=jnp.float32) + offset) / interpolate_factor
    angles = seq[:, None] * inv_freq[None, :]              # (S, D//2)
    freqs = jnp.repeat(angles, 2, axis=-1)                 # (S, D) interleaved
    cos_t = jnp.cos(freqs)
    sin_t = jnp.sin(freqs)
    is_even = (jnp.arange(D) % 2 == 0)[None, :]            # lane parity
    sin_e = jnp.where(is_even, -sin_t, 0.0)                # -sin on even lanes
    sin_o = jnp.where(is_even, 0.0, sin_t)                 # +sin on odd lanes

    BH = B * H
    x3 = x.reshape(BH, S, D)                               # leading-dim reshape: free
    bh_blk, s_blk = _choose_tiles(BH, S, D, x.dtype.itemsize)
    grid = (pl.cdiv(S, s_blk), pl.cdiv(BH, bh_blk))        # BH varies fastest →
                                                           # tables DMA'd once per S tile
    out = pl.pallas_call(
        _rope_kernel,
        out_shape=jax.ShapeDtypeStruct((BH, S, D), dtype),
        grid=grid,
        in_specs=[
            pl.BlockSpec((s_blk, D), lambda j, i: (j, 0)),             # cos
            pl.BlockSpec((s_blk, D), lambda j, i: (j, 0)),             # sin (even lanes)
            pl.BlockSpec((s_blk, D), lambda j, i: (j, 0)),             # sin (odd lanes)
            pl.BlockSpec((bh_blk, s_blk, D), lambda j, i: (i, j, 0)),  # x
        ],
        out_specs=pl.BlockSpec((bh_blk, s_blk, D), lambda j, i: (i, j, 0)),
        compiler_params=pltpu.CompilerParams(
            dimension_semantics=("parallel", "parallel")),
    )(cos_t, sin_e, sin_o, x3)

    return out.reshape(B, H, S, D)


class RotaryEmbeddingPallas:
    """JAX/Pallas port of the PyTorch RotaryEmbedding module ('lang' mode)."""

    def __init__(self, dim: int, theta: float = 10000.0,
                 theta_rescale_factor: float = 1.0,
                 interpolate_factor: float = 1.0):
        assert dim % 2 == 0, "rotary dim must be even"
        if interpolate_factor < 1.0:
            raise ValueError("interpolate_factor must be >= 1.0")
        theta = theta * theta_rescale_factor ** (dim / (dim - 2))
        # freqs = 1 / theta ** (arange(0, dim, 2) / dim)
        self.inv_freq = 1.0 / (
            theta ** (jnp.arange(0, dim, 2, dtype=jnp.float32) / dim)
        )                                                     # (dim//2,)
        self.dim = dim
        self.interpolate_factor = float(interpolate_factor)
        # TODO(synk): xpos scaling, 'pixel'/'constant' freq modes, learned freqs
        # and the PyTorch-side caching buffers are not ported; only the default
        # 'lang', use_xpos=False forward path is implemented.

    def rotate_queries_or_keys(self, x: jax.Array, offset: int = 0) -> jax.Array:
        """x: (B, H, S, D) with D == self.dim. Returns same shape/dtype."""
        assert x.ndim == 4 and x.shape[-1] == self.dim
        return _rope_forward(x, self.inv_freq, offset, self.interpolate_factor)


def _reference_rope(x, inv_freq, offset=0, interpolate_factor=1.0):
    """Plain-JAX reference mirroring the PyTorch apply_rotary_emb path."""
    B, H, S, D = x.shape
    seq = (jnp.arange(S, dtype=jnp.float32) + offset) / interpolate_factor
    angles = seq[:, None] * inv_freq[None, :]                 # (S, D//2)
    freqs = jnp.repeat(angles, 2, axis=-1)                    # (S, D) interleaved
    cos = jnp.cos(freqs)
    sin = jnp.sin(freqs)
    xr = x.reshape(B, H, S, D // 2, 2)
    x1, x2 = xr[..., 0], xr[..., 1]
    rot = jnp.stack([-x2, x1], axis=-1).reshape(B, H, S, D)
    return (x * cos + rot * sin).astype(x.dtype)


if __name__ == "__main__":
    B, Hh, S, D = 2, 4, 16, 128   # head_dim=128: typical RoPE head, lane-dense
    key = jax.random.PRNGKey(0)
    x = jax.random.normal(key, (B, Hh, S, D), dtype=jnp.float32)

    rope = RotaryEmbeddingPallas(dim=D)

    out = jax.block_until_ready(rope.rotate_queries_or_keys(x))
    ref = _reference_rope(x, rope.inv_freq)
    assert out.shape == x.shape and out.dtype == x.dtype
    assert jnp.allclose(out, ref, atol=1e-5, rtol=1e-5), "mismatch vs reference"

    # nonzero offset path
    out_off = jax.block_until_ready(rope.rotate_queries_or_keys(x, offset=3))
    ref_off = _reference_rope(x, rope.inv_freq, offset=3)
    assert jnp.allclose(out_off, ref_off, atol=1e-5, rtol=1e-5), "offset mismatch"

    print("KERNEL_OK")
</pallas_src>

<mosaic_0001>
module attributes {stable_mosaic.version = 11 : i64} {
  func.func @_rope_kernel(%arg0: i32, %arg1: i32, %arg2: memref<16x128xf32, #tpu.memory_space<vmem>>, %arg3: memref<16x128xf32, #tpu.memory_space<vmem>>, %arg4: memref<16x128xf32, #tpu.memory_space<vmem>>, %arg5: memref<8x16x128xf32, #tpu.memory_space<vmem>>, %arg6: memref<8x16x128xf32, #tpu.memory_space<vmem>>) attributes {dimension_semantics = [#tpu.dimension_semantics<parallel>, #tpu.dimension_semantics<parallel>], iteration_bounds = array<i64: 1, 1>, scalar_prefetch = 0 : i64, scratch_operands = 0 : i64, tpu.core_type = #tpu.core_type<tc>, window_params = [{transform_indices = @transform_0, window_bounds = array<i64: 16, 128>}, {transform_indices = @transform_1, window_bounds = array<i64: 16, 128>}, {transform_indices = @transform_2, window_bounds = array<i64: 16, 128>}, {transform_indices = @transform_3, window_bounds = array<i64: 8, 16, 128>}, {transform_indices = @transform_4, window_bounds = array<i64: 8, 16, 128>}]} {
    %c0 = arith.constant 0 : index
    %c0_0 = arith.constant 0 : index
    %c0_1 = arith.constant 0 : index
    %0 = vector.load %arg5[%c0, %c0_0, %c0_1] : memref<8x16x128xf32, #tpu.memory_space<vmem>>, vector<8x16x128xf32>
    %1 = vector.extract_strided_slice %0 {offsets = [0, 0, 1], sizes = [8, 16, 127], strides = [1, 1, 1]} : vector<8x16x128xf32> to vector<8x16x127xf32>
    %2 = vector.extract_strided_slice %0 {offsets = [0, 0, 0], sizes = [8, 16, 1], strides = [1, 1, 1]} : vector<8x16x128xf32> to vector<8x16x1xf32>
    %3 = tpu.concatenate %1, %2 in 2 : vector<8x16x127xf32>, vector<8x16x1xf32> -> vector<8x16x128xf32>
    %4 = vector.extract_strided_slice %0 {offsets = [0, 0, 127], sizes = [8, 16, 1], strides = [1, 1, 1]} : vector<8x16x128xf32> to vector<8x16x1xf32>
    %5 = vector.extract_strided_slice %0 {offsets = [0, 0, 0], sizes = [8, 16, 127], strides = [1, 1, 1]} : vector<8x16x128xf32> to vector<8x16x127xf32>
    %6 = tpu.concatenate %4, %5 in 2 : vector<8x16x1xf32>, vector<8x16x127xf32> -> vector<8x16x128xf32>
    %c0_2 = arith.constant 0 : index
    %c0_3 = arith.constant 0 : index
    %7 = vector.load %arg2[%c0_2, %c0_3] : memref<16x128xf32, #tpu.memory_space<vmem>>, vector<16x128xf32>
    %8 = vector.shape_cast %7 : vector<16x128xf32> to vector<1x16x128xf32>
    %9 = vector.broadcast %8 : vector<1x16x128xf32> to vector<8x16x128xf32>
    %10 = arith.mulf %0, %9 : vector<8x16x128xf32>
    %c0_4 = arith.constant 0 : index
    %c0_5 = arith.constant 0 : index
    %11 = vector.load %arg3[%c0_4, %c0_5] : memref<16x128xf32, #tpu.memory_space<vmem>>, vector<16x128xf32>
    %12 = vector.shape_cast %11 : vector<16x128xf32> to vector<1x16x128xf32>
    %13 = vector.broadcast %12 : vector<1x16x128xf32> to vector<8x16x128xf32>
    %14 = arith.mulf %3, %13 : vector<8x16x128xf32>
    %15 = arith.addf %10, %14 : vector<8x16x128xf32>
    %c0_6 = arith.constant 0 : index
    %c0_7 = arith.constant 0 : index
    %16 = vector.load %arg4[%c0_6, %c0_7] : memref<16x128xf32, #tpu.memory_space<vmem>>, vector<16x128xf32>
    %17 = vector.shape_cast %16 : vector<16x128xf32> to vector<1x16x128xf32>
    %18 = vector.broadcast %17 : vector<1x16x128xf32> to vector<8x16x128xf32>
    %19 = arith.mulf %6, %18 : vector<8x16x128xf32>
    %20 = arith.addf %15, %19 : vector<8x16x128xf32>
    %c0_8 = arith.constant 0 : index
    %c0_9 = arith.constant 0 : index
    %c0_10 = arith.constant 0 : index
    %21 = vector.load %arg6[%c0_8, %c0_9, %c0_10] : memref<8x16x128xf32, #tpu.memory_space<vmem>>, vector<8x16x128xf32>
    tpu.vector_store %arg6[%c0_8, %c0_9, %c0_10], %20 {strides = array<i32>} : memref<8x16x128xf32, #tpu.memory_space<vmem>>, vector<8x16x128xf32>,
    return
  }
  func.func @transform_0(%arg0: i32, %arg1: i32) -> (i32, i32) {
    %c0_i32 = arith.constant 0 : i32
    %c0_i32_0 = arith.constant 0 : i32
    return %arg0, %c0_i32 : i32, i32
  }
  func.func @transform_1(%arg0: i32, %arg1: i32) -> (i32, i32) {
    %c0_i32 = arith.constant 0 : i32
    %c0_i32_0 = arith.constant 0 : i32
    return %arg0, %c0_i32 : i32, i32
  }
  func.func @transform_2(%arg0: i32, %arg1: i32) -> (i32, i32) {
    %c0_i32 = arith.constant 0 : i32
    %c0_i32_0 = arith.constant 0 : i32
    return %arg0, %c0_i32 : i32, i32
  }
  func.func @transform_3(%arg0: i32, %arg1: i32) -> (i32, i32, i32) {
    %c0_i32 = arith.constant 0 : i32
    %c0_i32_0 = arith.constant 0 : i32
    return %arg1, %arg0, %c0_i32 : i32, i32, i32
  }
  func.func @transform_4(%arg0: i32, %arg1: i32) -> (i32, i32, i32) {
    %c0_i32 = arith.constant 0 : i32
    %c0_i32_0 = arith.constant 0 : i32
    return %arg1, %arg0, %c0_i32 : i32, i32, i32
  }
}

</mosaic_0001>

<bundles_post_ra>
// kernel: _rope_forward.1
= control target key start
LH: loop header
LB: loop body
LE: loop exit
PB: predicated region body
PF: predicated region fallthrough
CT: control target
= control target key end

     0   :  { %s293_s19 = smov 127   ;;  %s575_s0 = inlined_call_operand.vmem [shape: f32[16,128], index: 0, kind: input, shape index: {}]   ;;  %s576_s1 = inlined_call_operand.vmem [shape: f32[16,128], index: 1, kind: input, shape index: {}]   ;;  %s577_s2 = inlined_call_operand.vmem [shape: f32[16,128], index: 2, kind: input, shape index: {}]   ;;  %s578_s3 = inlined_call_operand.vmem [shape: f32[8,16,128], index: 3, kind: input, shape index: {}]   ;;  %s579_s4 = inlined_call_operand.hbm [shape: f32[8,16,128], index: 4, kind: output, shape index: {}]  }
   0x1   :  { %v326_v0 = vld [vmem:[%s578_s3 + $0x10] sm:$0xff]  ;;  %v331_v1 = vld [vmem:[%s578_s3] sm:$0xff]  ;;  %v340_v2 = vld [vmem:[%s578_s3 + $0x18] sm:$0xff] }
   0x2   :  { %54 = vrot.lane.b32.xlu1 %v326_v0, %s293_s19  ;;  %50 = vrot.lane.b32.xlu0 %v331_v1, %s293_s19  ;;  %v345_v3 = vld [vmem:[%s578_s3 + $0x8] sm:$0xff]  ;;  %v359_v5 = vld [vmem:[%s578_s3 + $0x20] sm:$0xff] }
   0x3   :  { %v354_v4 = vld [vmem:[%s578_s3 + $0x28] sm:$0xff] }
   0x6   :  { %56 = vrot.lane.b32.xlu1 %v340_v2, %s293_s19  ;;  %52 = vrot.lane.b32.xlu0 %v345_v3, %s293_s19 }
   0x7   :  { %9 = vsyncpa [#allocation3], 0  ;;  %v368_v6 = vld [vmem:[%s578_s3 + $0x38] sm:$0xff]  ;;  %v373_v7 = vld [vmem:[%s578_s3 + $0x30] sm:$0xff]  ;;  %s294_s23 = smov 1  }
   0x8   :  { %v382_v8 = vld [vmem:[%s578_s3 + $0x48] sm:$0xff]  ;;  %v387_v9 = vld [vmem:[%s578_s3 + $0x40] sm:$0xff]  ;;  %v396_v10 = vld [vmem:[%s578_s3 + $0x58] sm:$0xff] }
   0x9   :  { %v401_v11 = vld [vmem:[%s578_s3 + $0x50] sm:$0xff]  ;;  %v410_v12 = vld [vmem:[%s578_s3 + $0x68] sm:$0xff]  ;;  %v415_v13 = vld [vmem:[%s578_s3 + $0x60] sm:$0xff] }
   0xa   :  { %60 = vrot.lane.b32.xlu1 %v354_v4, %s293_s19  ;;  %58 = vrot.lane.b32.xlu0 %v359_v5, %s293_s19  ;;  %v424_v14 = vld [vmem:[%s578_s3 + $0x78] sm:$0xff]  ;;  %v429_v15 = vld [vmem:[%s578_s3 + $0x70] sm:$0xff] }
   0xb   :  { %v462_v30 = vld [vmem:[%s575_s0] sm:$0xff]  ;;  %v472_v32 = vld [vmem:[%s575_s0 + $0x8] sm:$0xff] }
   0xc   :  { %v467_v31 = vld [vmem:[%s576_s1] sm:$0xff]  ;;  %v477_v33 = vld [vmem:[%s576_s1 + $0x8] sm:$0xff]  ;;  %v148_v34 = vmul.f32 %v462_v30, %v331_v1  ;;  %v149_v38 = vmul.f32 %v472_v32, %v345_v3  ;;  %v150_v42 = vmul.f32 %v462_v30, %v326_v0  ;;  %v151_v43 = vmul.f32 %v472_v32, %v340_v2 }
   0xd   :  { %v492_v40 = vld [vmem:[%s577_s2 + $0x8] sm:$0xff]  ;;  %v497_v41 = vld [vmem:[%s577_s2] sm:$0xff]  ;;  %v153_v54 = vmul.f32 %v472_v32, %v354_v4  ;;  %v152_v55 = vmul.f32 %v462_v30, %v359_v5  ;;  %s295_s2 = smov [#allocation2]  }
   0xe   :  { %64 = vrot.lane.b32.xlu1 %v368_v6, %s293_s19  ;;  %62 = vrot.lane.b32.xlu0 %v373_v7, %s293_s19  ;;  %s253_s6 = sshll.u32 %s295_s2, 4  ;;  %s254_s6 = int_to_ptr.vmem [resolvable:$true] %s253_s6 }
   0xf   :  { %s269_s7 = scalar_lea.vmem %s254_s6, 2048  ;;  %p274_p1 = scmp.lt.s32.totalorder %s254_s6, %s254_s6 }
  0x10   :  { %p270_p0 = scmp.ne.s32.totalorder %s254_s6, %s269_s7  ;;  %p275_p2 = scmp.lt.s32.totalorder %s269_s7, %s269_s7 }
  0x12   :  { %68 = vrot.lane.b32.xlu1 %v382_v8, %s293_s19  ;;  %66 = vrot.lane.b32.xlu0 %v387_v9, %s293_s19  ;;  %p276_p3 = por %p275_p2, %p274_p1 }
  0x14   :  { %p277_p4 = pnand %p276_p3, %p270_p0 }
  0x16   :  { %72 = vrot.lane.b32.xlu1 %v396_v10, %s293_s19  ;;  %70 = vrot.lane.b32.xlu0 %v401_v11, %s293_s19 }
  0x1a   :  { %76 = vrot.lane.b32.xlu1 %v410_v12, %s293_s19  ;;  %74 = vrot.lane.b32.xlu0 %v415_v13, %s293_s19 }
  0x1e   :  { %80 = vrot.lane.b32.xlu1 %v424_v14, %s293_s19  ;;  %78 = vrot.lane.b32.xlu0 %v429_v15, %s293_s19 }
  0x22   :  { %100 = vrot.lane.b32.xlu1 %v345_v3, %s294_s23  ;;  %98 = vrot.lane.b32.xlu0 %v331_v1, %s294_s23  ;;  %v154_v3 = vmul.f32 %v462_v30, %v373_v7 }
  0x26   :  { %104 = vrot.lane.b32.xlu1 %v340_v2, %s294_s23  ;;  %102 = vrot.lane.b32.xlu0 %v326_v0, %s294_s23  ;;  %v155_v2 = vmul.f32 %v472_v32, %v368_v6 }
  0x2a   :  { %108 = vrot.lane.b32.xlu1 %v354_v4, %s294_s23  ;;  %106 = vrot.lane.b32.xlu0 %v359_v5, %s294_s23 }
  0x2e   :  { %112 = vrot.lane.b32.xlu1 %v368_v6, %s294_s23  ;;  %110 = vrot.lane.b32.xlu0 %v373_v7, %s294_s23  ;;  %v157_v6 = vmul.f32 %v472_v32, %v382_v8  ;;  %v156_v7 = vmul.f32 %v462_v30, %v387_v9 }
  0x32   :  { %116 = vrot.lane.b32.xlu1 %v382_v8, %s294_s23  ;;  %114 = vrot.lane.b32.xlu0 %v387_v9, %s294_s23  ;;  %v159_v8 = vmul.f32 %v472_v32, %v396_v10  ;;  %v158_v9 = vmul.f32 %v462_v30, %v401_v11 }
  0x36   :  { %120 = vrot.lane.b32.xlu1 %v396_v10, %s294_s23  ;;  %118 = vrot.lane.b32.xlu0 %v401_v11, %s294_s23  ;;  %v161_v11 = vmul.f32 %v472_v32, %v410_v12 }
  0x3a   :  { %124 = vrot.lane.b32.xlu1 %v410_v12, %s294_s23  ;;  %122 = vrot.lane.b32.xlu0 %v415_v13, %s294_s23 }
  0x3e   :  { %128 = vrot.lane.b32.xlu1 %v424_v14, %s294_s23  ;;  %126 = vrot.lane.b32.xlu0 %v429_v15, %s294_s23 }
  0x74   :  { %v55_v16 = vpop.permute.xlu1 %54  ;;  %v51_v17 = vpop.permute.xlu0 %50 }
  0x75   :  { %v166_v35 = vmul.f32 %v467_v31, %v51_v17  ;;  %v168_v44 = vmul.f32 %v467_v31, %v55_v16 }
  0x77   :  { %v182_v45 = vadd.f32 %v166_v35, %v148_v34  ;;  %v184_v60 = vadd.f32 %v168_v44, %v150_v42 }
  0x78   :  { %v57_v18 = vpop.permute.xlu1 %56  ;;  %v53_v19 = vpop.permute.xlu0 %52 }
  0x79   :  { %v167_v39 = vmul.f32 %v477_v33, %v53_v19  ;;  %v169_v48 = vmul.f32 %v477_v33, %v57_v18 }
  0x7b   :  { %v183_v49 = vadd.f32 %v167_v39, %v149_v38  ;;  %v185_v61 = vadd.f32 %v169_v48, %v151_v43 }
  0x7c   :  { %v61_v20 = vpop.permute.xlu1 %60  ;;  %v59_v21 = vpop.permute.xlu0 %58 }
  0x7d   :  { %v171_v56 = vmul.f32 %v477_v33, %v61_v20  ;;  %v170_v57 = vmul.f32 %v467_v31, %v59_v21 }
  0x7f   :  { %v187_v4 = vadd.f32 %v171_v56, %v153_v54  ;;  %v186_v5 = vadd.f32 %v170_v57, %v152_v55  ;;  %v160_v55 = vmul.f32 %v462_v30, %v415_v13  ;;  %v163_v13 = vmul.f32 %v472_v32, %v424_v14 }
  0x80   :  { %v65_v22 = vpop.permute.xlu1 %64  ;;  %v63_v23 = vpop.permute.xlu0 %62 }
  0x81   :  { %v173_v18 = vmul.f32 %v477_v33, %v65_v22  ;;  %v172_v19 = vmul.f32 %v467_v31, %v63_v23 }
  0x83   :  { %v189_v42 = vadd.f32 %v173_v18, %v155_v2  ;;  %v188_v43 = vadd.f32 %v172_v19, %v154_v3 }
  0x84   :  { %v69_v24 = vpop.permute.xlu1 %68  ;;  %v67_v25 = vpop.permute.xlu0 %66 }
  0x85   :  { %v175_v38 = vmul.f32 %v477_v33, %v69_v24  ;;  %v174_v22 = vmul.f32 %v467_v31, %v67_v25 }
  0x87   :  { %v191_v24 = vadd.f32 %v175_v38, %v157_v6  ;;  %v190_v25 = vadd.f32 %v174_v22, %v156_v7 }
  0x88   :  { %v451_v26 = vpop.permute.xlu1 %72  ;;  %v453_v27 = vpop.permute.xlu0 %70 }
  0x8c   :  { %v455_v28 = vpop.permute.xlu1 %76  ;;  %v457_v29 = vpop.permute.xlu0 %74 }
  0x90   :  { %v482_v36 = vpop.permute.xlu1 %80  ;;  %v484_v37 = vpop.permute.xlu0 %78 }
  0x91   :  { %v181_v2 = vmul.f32 %v477_v33, %v482_v36  ;;  %v180_v3 = vmul.f32 %v467_v31, %v484_v37 }
  0x94   :  { %v101_v46 = vpop.permute.xlu1 %100  ;;  %v99_v47 = vpop.permute.xlu0 %98 }
  0x95   :  { %v201_v50 = vmul.f32 %v492_v40, %v101_v46  ;;  %v200_v51 = vmul.f32 %v497_v41, %v99_v47 }
  0x97   :  { %v217_v52 = vadd.f32 %v201_v50, %v183_v49  ;;  %v216_v53 = vadd.f32 %v200_v51, %v182_v45  ;;  %v177_v50 = vmul.f32 %v477_v33, %v451_v26  ;;  %v176_v51 = vmul.f32 %v467_v31, %v453_v27 }
  0x98   :  { %v105_v58 = vpop.permute.xlu1 %104  ;;  %v103_v59 = vpop.permute.xlu0 %102  ;;  %v179_v26 = vmul.f32 %v477_v33, %v455_v28  ;;  %v178_v27 = vmul.f32 %v467_v31, %v457_v29  ;;  %v162_v28 = vmul.f32 %v462_v30, %v429_v15 }
  0x99   :  { %233 = vst [vmem:[#allocation2 + $0x8] sm:$0xff] %v217_v52  ;;  %232 = vst [vmem:[#allocation2] sm:$0xff] %v216_v53  ;;  %v203_v62 = vmul.f32 %v492_v40, %v105_v58  ;;  %v202_v63 = vmul.f32 %v497_v41, %v103_v59  ;;  %v193_v58 = vadd.f32 %v177_v50, %v159_v8 }
  0x9a   :  { %v192_v59 = vadd.f32 %v176_v51, %v158_v9  ;;  %v194_v29 = vadd.f32 %v178_v27, %v160_v55 }
  0x9b   :  { %v219_v0 = vadd.f32 %v203_v62, %v185_v61  ;;  %v218_v1 = vadd.f32 %v202_v63, %v184_v60  ;;  %v195_v63 = vadd.f32 %v179_v26, %v161_v11 }
  0x9c   :  { %v109_v16 = vpop.permute.xlu1 %108  ;;  %v107_v17 = vpop.permute.xlu0 %106 }
  0x9d   :  { %235 = vst [vmem:[#allocation2 + $0x18] sm:$0xff] %v219_v0  ;;  %234 = vst [vmem:[#allocation2 + $0x10] sm:$0xff] %v218_v1  ;;  %v205_v20 = vmul.f32 %v492_v40, %v109_v16  ;;  %v204_v21 = vmul.f32 %v497_v41, %v107_v17  ;;  %v197_v16 = vadd.f32 %v181_v2, %v163_v13 }
  0x9e   :  { %v196_v17 = vadd.f32 %v180_v3, %v162_v28 }
  0x9f   :  { %v221_v34 = vadd.f32 %v205_v20, %v187_v4  ;;  %v220_v35 = vadd.f32 %v204_v21, %v186_v5 }
  0xa0   :  { %v113_v39 = vpop.permute.xlu1 %112  ;;  %v111_v23 = vpop.permute.xlu0 %110 }
  0xa1   :  { %237 = vst [vmem:[#allocation2 + $0x28] sm:$0xff] %v221_v34  ;;  %236 = vst [vmem:[#allocation2 + $0x20] sm:$0xff] %v220_v35  ;;  %v207_v44 = vmul.f32 %v492_v40, %v113_v39  ;;  %v206_v45 = vmul.f32 %v497_v41, %v111_v23 }
  0xa3   :  { %v223_v46 = vadd.f32 %v207_v44, %v189_v42  ;;  %v222_v47 = vadd.f32 %v206_v45, %v188_v43 }
  0xa4   :  { %v117_v48 = vpop.permute.xlu1 %116  ;;  %v115_v49 = vpop.permute.xlu0 %114 }
  0xa5   :  { %239 = vst [vmem:[#allocation2 + $0x38] sm:$0xff] %v223_v46  ;;  %238 = vst [vmem:[#allocation2 + $0x30] sm:$0xff] %v222_v47  ;;  %v209_v52 = vmul.f32 %v492_v40, %v117_v48  ;;  %v208_v53 = vmul.f32 %v497_v41, %v115_v49 }
  0xa7   :  { %v225_v10 = vadd.f32 %v209_v52, %v191_v24  ;;  %v224_v54 = vadd.f32 %v208_v53, %v190_v25 }
  0xa8   :  { %v121_v56 = vpop.permute.xlu1 %120  ;;  %v119_v57 = vpop.permute.xlu0 %118 }
  0xa9   :  { %241 = vst [vmem:[#allocation2 + $0x48] sm:$0xff] %v225_v10  ;;  %240 = vst [vmem:[#allocation2 + $0x40] sm:$0xff] %v224_v54  ;;  %v211_v60 = vmul.f32 %v492_v40, %v121_v56  ;;  %v210_v61 = vmul.f32 %v497_v41, %v119_v57 }
  0xab   :  { %v227_v12 = vadd.f32 %v211_v60, %v193_v58  ;;  %v226_v62 = vadd.f32 %v210_v61, %v192_v59 }
  0xac   :  { %v125_v0 = vpop.permute.xlu1 %124  ;;  %v123_v1 = vpop.permute.xlu0 %122 }
  0xad   :  { %243 = vst [vmem:[#allocation2 + $0x58] sm:$0xff] %v227_v12  ;;  %242 = vst [vmem:[#allocation2 + $0x50] sm:$0xff] %v226_v62  ;;  %v213_v4 = vmul.f32 %v492_v40, %v125_v0  ;;  %v212_v5 = vmul.f32 %v497_v41, %v123_v1 }
  0xaf   :  { %v229_v14 = vadd.f32 %v213_v4, %v195_v63  ;;  %v228_v32 = vadd.f32 %v212_v5, %v194_v29 }
  0xb0   :  { %v129_v15 = vpop.permute.xlu1 %128  ;;  %v127_v30 = vpop.permute.xlu0 %126 }
  0xb1   :  { %245 = vst [vmem:[#allocation2 + $0x68] sm:$0xff] %v229_v14  ;;  %244 = vst [vmem:[#allocation2 + $0x60] sm:$0xff] %v228_v32  ;;  %v215_v33 = vmul.f32 %v492_v40, %v129_v15  ;;  %v214_v31 = vmul.f32 %v497_v41, %v127_v30 }
  0xb3   :  { %v231_v36 = vadd.f32 %v215_v33, %v197_v16  ;;  %v230_v37 = vadd.f32 %v214_v31, %v196_v17 }
  0xb5   :  { %247 = vst [vmem:[#allocation2 + $0x78] sm:$0xff] %v231_v36  ;;  %246 = vst [vmem:[#allocation2 + $0x70] sm:$0xff] %v230_v37 }
  0xb6   :  { %280 = shalt.err (!%p277_p4)
}
  0xb7   :  { %s281_s10 = scalar_lea.hbm %s579_s4, 2048 }
  0xb8   :  { %p282_p5 = scmp.ne.s32.totalorder %s579_s4, %s281_s10  ;;  %p285_p6 = scmp.lt.u32.totalorder %s281_s10, %s579_s4 }
  0xba   :  { %p287_p7 = pnand %p285_p6, %p282_p5 }
  0xbc   :  { %290 = shalt.err (!%p287_p7)
}
  0xbd   :  { %s296_s15 = smov 128   ;;  %s297_s16 = smov 8  }
  0xbe   :  { %259 = dma.vmem_to_hbm [thread:$0]  %s254_s6, 2048, %s579_s4, [#allocation3], %s296_s15, %s296_s15, %s297_s16  }
  0xbf   :  { %291 = dma.done.wait [#allocation3], 2048  }
  0xc0   :  { %292 = vsyncadd [#allocation3], 4294965248 }
  0xc1   :  { %263 = vsyncpa [#allocation3], 1 }

</bundles_post_ra>
